<compile_context>
chip_gen: v6e
topology: v6e:2x2x1
jax: 0.10.0
libtpu: 0.0.40
codegen_flags: <defaults>
</compile_context>

<pallas_src>
import functools
import math

import jax
import jax.numpy as jnp
from jax.experimental import pallas as pl
from jax.experimental.pallas import tpu as pltpu

MARGIN = 0.3
SCALE = 32.0


def _am_loss_kernel(labels_ref, logits_ref, out_ref, m_sc, l_sc, t_sc,
                    *, margin, scale, c_total, block_c, ragged_c):
    """One (block_b, block_c) tile of the AM-softmax cross-entropy.

    Grid: (batch_tiles [parallel], class_tiles [arbitrary, innermost]).
    Scratch (per batch tile, carried across class tiles):
      m_sc : (block_b, 1) running max of s = scale*logits
      l_sc : (block_b, 1) running sum of exp(pred - m)  (margin folded in as a
                          per-row correction)
      t_sc : (block_b, 1) margined target logit accumulator
    Output: per-row CE loss (block_b, 1), written once on the last class step.
    """
    j = pl.program_id(1)

    @pl.when(j == 0)
    def _():
        m_sc[...] = jnp.full_like(m_sc, -jnp.inf)
        l_sc[...] = jnp.zeros_like(l_sc)
        t_sc[...] = jnp.zeros_like(t_sc)

    s = logits_ref[...].astype(jnp.float32) * jnp.float32(scale)   # (TB, TC)
    tb, tc = s.shape

    lane = jax.lax.broadcasted_iota(jnp.int32, (tb, tc), 1)        # local ids

    if ragged_c:
        # Mask lanes past the true class count (garbage in the padded tail of
        # the last class tile): -inf contributes 0 to the sum-exp path and
        # never wins the max.
        limit = jnp.int32(c_total) - j * jnp.int32(block_c)
        s = jnp.where(lane < limit, s, -jnp.inf)

    # Label match against local lane ids (no full-width `+ j*block_c` add).
    shifted = labels_ref[...] - j * jnp.int32(block_c)             # (TB, 1)
    label_mask = lane == shifted                                   # (TB, TC)
    in_tile = (shifted >= 0) & (shifted < jnp.int32(block_c))      # (TB, 1)

    # Raw (un-margined) target logit restricted to this tile (0 if absent).
    t_raw = jnp.sum(jnp.where(label_mask, s, jnp.float32(0.0)),
                    axis=-1, keepdims=True)                        # (TB, 1)

    # Online log-sum-exp over the *un-margined* s (valid bound: pred <= s).
    m_prev = m_sc[...]
    m_new = jnp.maximum(m_prev, jnp.max(s, axis=-1, keepdims=True))
    alpha = jnp.exp(m_prev - m_new)                                # 0 on step 0

    row_sum = jnp.sum(jnp.exp(s - m_new), axis=-1, keepdims=True)

    # Per-row margin correction:
    #   exp(t_raw - sm - m) - exp(t_raw - m) = exp(t_raw - m) * (exp(-sm) - 1)
    sm = jnp.float32(scale * margin)
    corr = jnp.where(in_tile,
                     jnp.exp(t_raw - m_new)
                     * jnp.float32(math.exp(-scale * margin) - 1.0),
                     jnp.float32(0.0))

    l_sc[...] = alpha * l_sc[...] + row_sum + corr
    m_sc[...] = m_new
    t_sc[...] += jnp.where(in_tile, t_raw - sm, jnp.float32(0.0))

    @pl.when(j == pl.num_programs(1) - 1)
    def _():
        # per-row CE loss = logsumexp(pred) - pred[label]
        out_ref[...] = m_sc[...] + jnp.log(l_sc[...]) - t_sc[...]


def _pick_batch_block(b, align, target):
    """Largest multiple of `align` dividing b and <= target; fallback b."""
    if b <= align:
        return b
    best = None
    d = align
    cap = min(b, target)
    while d <= cap:
        if b % d == 0:
            best = d
        d += align
    return best if best is not None else b


def am_loss(logits, labels, *, margin=MARGIN, scale=SCALE,
            block_b=None, block_c=None):
    """logits: (B, C) float32/bfloat16; labels: (B,) int. Returns scalar f32."""
    b, c = logits.shape
    itemsize = jnp.dtype(logits.dtype).itemsize
    sublane_align = 8 if itemsize >= 4 else 16        # f32 vs bf16 sublane pack

    if block_b is None:
        # Cap so the (parallel) batch axis has >= 2 tiles where possible, so
        # v7x's second TensorCore gets work; no effect on single-TC v5e/v6e.
        if b >= 2 * sublane_align:
            target_b = max(sublane_align, min(128, b // 2))
        else:
            target_b = b
        block_b = _pick_batch_block(b, sublane_align, target_b)
    assert b % block_b == 0, "block_b must divide the batch dimension"

    if block_c is None:
        # 4096 f32 lanes -> <=2 MiB logits tile at block_b<=128; fits every
        # chip's default scoped VMEM with double-buffering.
        block_c = c if c <= 4096 else 4096
    assert block_c == c or block_c % 128 == 0, \
        "block_c must be a multiple of 128 (or equal to the class count)"

    n_c = pl.cdiv(c, block_c)
    ragged_c = (c % block_c) != 0

    labels2d = labels.astype(jnp.int32).reshape(b, 1)

    kernel = functools.partial(
        _am_loss_kernel, margin=float(margin), scale=float(scale),
        c_total=c, block_c=block_c, ragged_c=ragged_c)

    cost = pl.CostEstimate(
        flops=10 * b * c,
        transcendentals=b * c,
        bytes_accessed=b * c * itemsize + b * 4 * 2,
    )

    per_row = pl.pallas_call(
        kernel,
        out_shape=jax.ShapeDtypeStruct((b, 1), jnp.float32),
        grid_spec=pltpu.PrefetchScalarGridSpec(
            num_scalar_prefetch=0,
            grid=(b // block_b, n_c),                 # class (reduction) last
            in_specs=[
                # labels: constant across the class axis -> no re-DMA per j.
                pl.BlockSpec((block_b, 1), lambda i, j: (i, 0)),
                pl.BlockSpec((block_b, block_c), lambda i, j: (i, j)),
            ],
            out_specs=pl.BlockSpec((block_b, 1), lambda i, j: (i, 0)),
            scratch_shapes=[
                pltpu.VMEM((block_b, 1), jnp.float32),   # running max
                pltpu.VMEM((block_b, 1), jnp.float32),   # running sum-exp
                pltpu.VMEM((block_b, 1), jnp.float32),   # margined target logit
            ],
        ),
        compiler_params=pltpu.CompilerParams(
            # batch tiles are independent (disjoint outputs) -> megacore-able;
            # class axis carries the online-LSE reduction -> arbitrary.
            dimension_semantics=("parallel", "arbitrary")),
        cost_estimate=cost,
    )(labels2d, logits)

    # CrossEntropy(reduction='sum') / batch_size
    return jnp.sum(per_row) / jnp.float32(b)


def _am_loss_ref(logits, labels, margin=MARGIN, scale=SCALE):
    b, c = logits.shape
    onehot = jax.nn.one_hot(labels, c, dtype=jnp.float32)
    pred = scale * (logits.astype(jnp.float32) - margin * onehot)
    lse = jax.scipy.special.logsumexp(pred, axis=-1)
    tgt = jnp.take_along_axis(pred, labels[:, None], axis=-1)[:, 0]
    return jnp.sum(lse - tgt) / b


if __name__ == "__main__":
    key = jax.random.PRNGKey(0)
    k_feat, k_logit, k_lab = jax.random.split(key, 3)

    B, FEAT_DIM, NUM_CLASSES = 16, 32, 256
    # `features` is part of the module's input dict but never used by the loss.
    features = jax.random.normal(k_feat, (B, FEAT_DIM), dtype=jnp.float32)
    logits = jax.random.normal(k_logit, (B, NUM_CLASSES), dtype=jnp.float32)
    labels = jax.random.randint(k_lab, (B,), 0, NUM_CLASSES, dtype=jnp.int32)

    ref = _am_loss_ref(logits, labels)

    # Auto-tiled path (2 batch tiles x 1 class tile at this size).
    loss = jax.block_until_ready(am_loss(logits, labels))
    assert jnp.allclose(loss, ref, rtol=1e-5, atol=1e-5), (loss, ref)

    # Explicit multi-tile path (2 batch x 2 class tiles, online LSE carries).
    loss2 = jax.block_until_ready(am_loss(logits, labels, block_b=8, block_c=128))
    assert jnp.allclose(loss2, ref, rtol=1e-5, atol=1e-5), (loss2, ref)

    # Ragged class axis: C=200 with block_c=128 -> masked 72-lane tail tile.
    C2 = 200
    logits_r = jax.random.normal(k_logit, (B, C2), dtype=jnp.float32)
    labels_r = jax.random.randint(k_lab, (B,), 0, C2, dtype=jnp.int32)
    ref_r = _am_loss_ref(logits_r, labels_r)
    loss_r = jax.block_until_ready(
        am_loss(logits_r, labels_r, block_b=8, block_c=128))
    assert jnp.allclose(loss_r, ref_r, rtol=1e-5, atol=1e-5), (loss_r, ref_r)

    print("KERNEL_OK")
</pallas_src>

<mosaic_0001>
module attributes {stable_mosaic.version = 11 : i64} {
  func.func @_am_loss_kernel(%arg0: i32, %arg1: i32, %arg2: memref<8x1xi32, #tpu.memory_space<vmem>>, %arg3: memref<8x256xf32, #tpu.memory_space<vmem>>, %arg4: memref<8x1xf32, #tpu.memory_space<vmem>>, %arg5: memref<8x1xf32, #tpu.memory_space<vmem>>, %arg6: memref<8x1xf32, #tpu.memory_space<vmem>>, %arg7: memref<8x1xf32, #tpu.memory_space<vmem>>) attributes {dimension_semantics = [#tpu.dimension_semantics<parallel>, #tpu.dimension_semantics<arbitrary>], iteration_bounds = array<i64: 2, 1>, scalar_prefetch = 0 : i64, scratch_operands = 3 : i64, tpu.core_type = #tpu.core_type<tc>, window_params = [{transform_indices = @transform_0, window_bounds = array<i64: 8, 1>}, {transform_indices = @transform_1, window_bounds = array<i64: 8, 256>}, {transform_indices = @transform_2, window_bounds = array<i64: 8, 1>}]} {
    %c0_i32 = arith.constant 0 : i32
    %0 = arith.cmpi eq, %arg1, %c0_i32 : i32
    %1 = arith.extui %0 : i1 to i32
    %c0_i32_0 = arith.constant 0 : i32
    %2 = arith.cmpi ne, %1, %c0_i32_0 : i32
    scf.if %2 {
      %cst_28 = arith.constant 0xFF800000 : f32
      %55 = vector.broadcast %cst_28 : f32 to vector<8x1xf32>
      %c0_29 = arith.constant 0 : index
      %c0_30 = arith.constant 0 : index
      %56 = vector.load %arg5[%c0_29, %c0_30] : memref<8x1xf32, #tpu.memory_space<vmem>>, vector<8x1xf32>
      tpu.vector_store %arg5[%c0_29, %c0_30], %55 {strides = array<i32>} : memref<8x1xf32, #tpu.memory_space<vmem>>, vector<8x1xf32>,
      %cst_31 = arith.constant 0.000000e+00 : f32
      %57 = vector.broadcast %cst_31 : f32 to vector<8x1xf32>
      %c0_32 = arith.constant 0 : index
      %c0_33 = arith.constant 0 : index
      %58 = vector.load %arg6[%c0_32, %c0_33] : memref<8x1xf32, #tpu.memory_space<vmem>>, vector<8x1xf32>
      tpu.vector_store %arg6[%c0_32, %c0_33], %57 {strides = array<i32>} : memref<8x1xf32, #tpu.memory_space<vmem>>, vector<8x1xf32>,
      %cst_34 = arith.constant 0.000000e+00 : f32
      %59 = vector.broadcast %cst_34 : f32 to vector<8x1xf32>
      %c0_35 = arith.constant 0 : index
      %c0_36 = arith.constant 0 : index
      %60 = vector.load %arg7[%c0_35, %c0_36] : memref<8x1xf32, #tpu.memory_space<vmem>>, vector<8x1xf32>
      tpu.vector_store %arg7[%c0_35, %c0_36], %59 {strides = array<i32>} : memref<8x1xf32, #tpu.memory_space<vmem>>, vector<8x1xf32>,
    } else {
    }
    %c0 = arith.constant 0 : index
    %c0_1 = arith.constant 0 : index
    %3 = vector.load %arg3[%c0, %c0_1] : memref<8x256xf32, #tpu.memory_space<vmem>>, vector<8x256xf32>
    %cst = arith.constant 3.200000e+01 : f32
    %4 = vector.broadcast %cst : f32 to vector<8x256xf32>
    %5 = arith.mulf %3, %4 : vector<8x256xf32>
    %6 = tpu.iota {dimensions = array<i32: 1>} : vector<8x256xi32>
    %c0_2 = arith.constant 0 : index
    %c0_3 = arith.constant 0 : index
    %7 = vector.load %arg2[%c0_2, %c0_3] : memref<8x1xi32, #tpu.memory_space<vmem>>, vector<8x1xi32>
    %c256_i32 = arith.constant 256 : i32
    %8 = arith.muli %arg1, %c256_i32 : i32
    %9 = vector.broadcast %8 : i32 to vector<8x1xi32>
    %10 = arith.subi %7, %9 : vector<8x1xi32>
    %11 = vector.broadcast %10 : vector<8x1xi32> to vector<8x256xi32>
    %12 = arith.cmpi eq, %6, %11 : vector<8x256xi32>
    %c0_i32_4 = arith.constant 0 : i32
    %13 = vector.broadcast %c0_i32_4 : i32 to vector<8x1xi32>
    %14 = arith.cmpi sge, %10, %13 : vector<8x1xi32>
    %c256_i32_5 = arith.constant 256 : i32
    %15 = vector.broadcast %c256_i32_5 : i32 to vector<8x1xi32>
    %16 = arith.cmpi slt, %10, %15 : vector<8x1xi32>
    %17 = arith.andi %14, %16 : vector<8x1xi1>
    %cst_6 = arith.constant 0.000000e+00 : f32
    %18 = vector.broadcast %cst_6 : f32 to vector<8x256xf32>
    %19 = arith.select %12, %5, %18 : vector<8x256xi1>, vector<8x256xf32>
    %cst_7 = arith.constant dense<0.000000e+00> : vector<8xf32>
    %20 = vector.multi_reduction <add>, %19, %cst_7 [1] : vector<8x256xf32> to vector<8xf32>
    %21 = vector.shape_cast %20 : vector<8xf32> to vector<8x1xf32>
    %c0_8 = arith.constant 0 : index
    %c0_9 = arith.constant 0 : index
    %22 = vector.load %arg5[%c0_8, %c0_9] : memref<8x1xf32, #tpu.memory_space<vmem>>, vector<8x1xf32>
    %cst_10 = arith.constant dense<0xFF800000> : vector<8xf32>
    %23 = vector.multi_reduction <maximumf>, %5, %cst_10 [1] : vector<8x256xf32> to vector<8xf32>
    %24 = vector.shape_cast %23 : vector<8xf32> to vector<8x1xf32>
    %25 = arith.maximumf %22, %24 : vector<8x1xf32>
    %26 = arith.subf %22, %25 : vector<8x1xf32>
    %27 = math.exp %26 : vector<8x1xf32>
    %28 = vector.broadcast %25 : vector<8x1xf32> to vector<8x256xf32>
    %29 = arith.subf %5, %28 : vector<8x256xf32>
    %30 = math.exp %29 : vector<8x256xf32>
    %cst_11 = arith.constant dense<0.000000e+00> : vector<8xf32>
    %31 = vector.multi_reduction <add>, %30, %cst_11 [1] : vector<8x256xf32> to vector<8xf32>
    %32 = vector.shape_cast %31 : vector<8xf32> to vector<8x1xf32>
    %33 = arith.subf %21, %25 : vector<8x1xf32>
    %34 = math.exp %33 : vector<8x1xf32>
    %cst_12 = arith.constant -0.999932289 : f32
    %35 = vector.broadcast %cst_12 : f32 to vector<8x1xf32>
    %36 = arith.mulf %34, %35 : vector<8x1xf32>
    %cst_13 = arith.constant 0.000000e+00 : f32
    %37 = vector.broadcast %cst_13 : f32 to vector<8x1xf32>
    %38 = arith.select %17, %36, %37 : vector<8x1xi1>, vector<8x1xf32>
    %c0_14 = arith.constant 0 : index
    %c0_15 = arith.constant 0 : index
    %39 = vector.load %arg6[%c0_14, %c0_15] : memref<8x1xf32, #tpu.memory_space<vmem>>, vector<8x1xf32>
    %40 = arith.mulf %27, %39 : vector<8x1xf32>
    %41 = arith.addf %40, %32 : vector<8x1xf32>
    %42 = arith.addf %41, %38 : vector<8x1xf32>
    %c0_16 = arith.constant 0 : index
    %c0_17 = arith.constant 0 : index
    %43 = vector.load %arg6[%c0_16, %c0_17] : memref<8x1xf32, #tpu.memory_space<vmem>>, vector<8x1xf32>
    tpu.vector_store %arg6[%c0_16, %c0_17], %42 {strides = array<i32>} : memref<8x1xf32, #tpu.memory_space<vmem>>, vector<8x1xf32>,
    %c0_18 = arith.constant 0 : index
    %c0_19 = arith.constant 0 : index
    %44 = vector.load %arg5[%c0_18, %c0_19] : memref<8x1xf32, #tpu.memory_space<vmem>>, vector<8x1xf32>
    tpu.vector_store %arg5[%c0_18, %c0_19], %25 {strides = array<i32>} : memref<8x1xf32, #tpu.memory_space<vmem>>, vector<8x1xf32>,
    %c0_20 = arith.constant 0 : index
    %c0_21 = arith.constant 0 : index
    %45 = vector.load %arg7[%c0_20, %c0_21] : memref<8x1xf32, #tpu.memory_space<vmem>>, vector<8x1xf32>
    %cst_22 = arith.constant 9.600000e+00 : f32
    %46 = vector.broadcast %cst_22 : f32 to vector<8x1xf32>
    %47 = arith.subf %21, %46 : vector<8x1xf32>
    %cst_23 = arith.constant 0.000000e+00 : f32
    %48 = vector.broadcast %cst_23 : f32 to vector<8x1xf32>
    %49 = arith.select %17, %47, %48 : vector<8x1xi1>, vector<8x1xf32>
    %50 = arith.addf %45, %49 : vector<8x1xf32>
    %c0_24 = arith.constant 0 : index
    %c0_25 = arith.constant 0 : index
    %51 = vector.load %arg7[%c0_24, %c0_25] : memref<8x1xf32, #tpu.memory_space<vmem>>, vector<8x1xf32>
    tpu.vector_store %arg7[%c0_24, %c0_25], %50 {strides = array<i32>} : memref<8x1xf32, #tpu.memory_space<vmem>>, vector<8x1xf32>,
    %c0_i32_26 = arith.constant 0 : i32
    %52 = arith.cmpi eq, %arg1, %c0_i32_26 : i32
    %53 = arith.extui %52 : i1 to i32
    %c0_i32_27 = arith.constant 0 : i32
    %54 = arith.cmpi ne, %53, %c0_i32_27 : i32
    scf.if %54 {
      %c0_28 = arith.constant 0 : index
      %c0_29 = arith.constant 0 : index
      %55 = vector.load %arg5[%c0_28, %c0_29] : memref<8x1xf32, #tpu.memory_space<vmem>>, vector<8x1xf32>
      %c0_30 = arith.constant 0 : index
      %c0_31 = arith.constant 0 : index
      %56 = vector.load %arg6[%c0_30, %c0_31] : memref<8x1xf32, #tpu.memory_space<vmem>>, vector<8x1xf32>
      %57 = math.log %56 : vector<8x1xf32>
      %58 = arith.addf %55, %57 : vector<8x1xf32>
      %c0_32 = arith.constant 0 : index
      %c0_33 = arith.constant 0 : index
      %59 = vector.load %arg7[%c0_32, %c0_33] : memref<8x1xf32, #tpu.memory_space<vmem>>, vector<8x1xf32>
      %60 = arith.subf %58, %59 : vector<8x1xf32>
      %c0_34 = arith.constant 0 : index
      %c0_35 = arith.constant 0 : index
      %61 = vector.load %arg4[%c0_34, %c0_35] : memref<8x1xf32, #tpu.memory_space<vmem>>, vector<8x1xf32>
      tpu.vector_store %arg4[%c0_34, %c0_35], %60 {strides = array<i32>} : memref<8x1xf32, #tpu.memory_space<vmem>>, vector<8x1xf32>,
    } else {
    }
    return
  }
  func.func @transform_0(%arg0: i32, %arg1: i32) -> (i32, i32) {
    %c0_i32 = arith.constant 0 : i32
    %c0_i32_0 = arith.constant 0 : i32
    return %arg0, %c0_i32 : i32, i32
  }
  func.func @transform_1(%arg0: i32, %arg1: i32) -> (i32, i32) {
    %c0_i32 = arith.constant 0 : i32
    return %arg0, %arg1 : i32, i32
  }
  func.func @transform_2(%arg0: i32, %arg1: i32) -> (i32, i32) {
    %c0_i32 = arith.constant 0 : i32
    %c0_i32_0 = arith.constant 0 : i32
    return %arg0, %c0_i32 : i32, i32
  }
}

</mosaic_0001>

<bundles_post_ra>
// kernel: tpu_custom_call.1
= control target key start
LH: loop header
LB: loop body
LE: loop exit
PB: predicated region body
PF: predicated region fallthrough
CT: control target
= control target key end

     0   :  { %7 = vsyncpa [#allocation6], 0  ;;  %s673_s0 = inlined_call_operand.vmem [shape: s32[16,1], index: 0, kind: input, shape index: {}]   ;;  %s674_s1 = inlined_call_operand.hbm [shape: f32[16,256], index: 1, kind: input, shape index: {}]   ;;  %s675_s2 = inlined_call_operand.vmem [shape: f32[16,1], index: 2, kind: output, shape index: {}]  }
   0x1   :  { %9 = vsyncpa [#allocation6 + $0x1], 0  ;;  %s548_s9 = smov 0   ;;  %s550_s10 = smov 0  }
   0x2   :  { %s552_s11 = smov 0   ;;  %s554_s12 = smov 0  }
   0x3   :  { %s556_s13 = smov 0   ;;  %s558_s14 = smov 0  }
   0x4 LB: > { %s364_s15 = sadd.s32 4294967295, %s527_s14   ;;  %s27_s16 = sadd.s32 1, %s523_s13  ;;  %s527_s14 = sphi %s558_s14, %s15_s14   ;;  %s523_s13 = sphi %s556_s13, %s685_s13   ;;  %s519_s12 = sphi %s554_s12, %s684_s12   ;;  %s515_s11 = sphi %s552_s11, %s683_s11   ;;  %s511_s10 = sphi %s550_s10, %s682_s10   ;;  %s507_s9 = sphi %s548_s9, %s681_s9  }
   0x5   : > { %p29_p0 = scmp.ge.s32.totalorder %s27_s16, 2  ;;  %s62_s17 = sadd.s32 1, %s515_s11 }
   0x6   : > { %p69_p1 = scmp.ne.s32.totalorder %s515_s11, %s511_s10  ;;  %p70_p2 = scmp.eq.s32.totalorder %s527_s14, 0 }
   0x7   : > { %s687_s16 = smov (%p29_p0, %s27_s16), 0  ;;  %p75_p4 = scmp.ne.s32.totalorder %s511_s10, %s507_s9 }
   0x8   : > { %p584_p3 = por %p70_p2, %p69_p1  ;;  %s57_s19 = ssub.s32 %s523_s13, %s687_s16 }
   0x9   : > { %p76_p5 = scmp.eq.s32.totalorder %s364_s15, 0  ;;  %p60_p6 = scmp.eq.s32.totalorder %s57_s19, 0 }
   0xa   : > { %p385_p8 = scmp.lt.s32.totalorder %s527_s14, 2  ;;  %s132_s22 = sand.u32 1, %s515_s11  }
   0xb   : > { %p591_p7 = por %p76_p5, %p75_p4  ;;  %s378_s23 = sshll.u32 %s523_s13, 8 }
   0xc   : > { %s597_s21 = scalar_select %p60_p6, %s515_s11, %s62_s17  }
   0xd   : > { %s368_s24 = sshll.u32 %s132_s22, 4  ;;  %s144_s27 = scalar_lea.hbm %s674_s1, %s378_s23 }
   0xe   : > { %s136_s28 = scalar_lea.vmem [#allocation5], %s368_s24  ;;  %p606_p9 = pnand %p385_p8, %p584_p3 }
   0xf   : > { %s146_s29 = sshll.u32 %s136_s28, 4  ;;  %p371_p10 = scmp.ge.s32.totalorder %s527_s14, 1  ;;  %s147_s29 = int_to_ptr.vmem [resolvable:$true] %s146_s29 }
  0x10   : > { %p151_p11 = scmp.lt.s32.totalorder %s527_s14, 3  ;;  %s133_s3 = scalar_lea.sflag [#allocation6], %s132_s22 }
  0x11   : > { %p451_p12 = pneg %p606_p9  ;;  %s462_s4 = scalar_lea.vmem %s147_s29, 256 }
  0x12   : > { %p463_p13 = scmp.ne.s32.totalorder %s147_s29, %s462_s4  ;;  %s529_s5 = smov [#allocation5]  }
  0x13   : > { %s467_s6 = sshll.u32 %s529_s5, 4  ;;  %s468_s6 = int_to_ptr.vmem [resolvable:$false] %s467_s6 }
  0x14   : > { %p465_p0 = pnand %p463_p13, %p451_p12  ;;  %s469_s7 = scalar_lea.vmem %s468_s6, 512 }
  0x15   : > { %p470_p2 = scmp.lt.s32.totalorder %s147_s29, %s468_s6  ;;  %p471_p3 = scmp.lt.s32.totalorder %s469_s7, %s462_s4 }
  0x16   : > { %p466_p1 = pneg %p465_p0 }
  0x17   : > { %p472_p4 = por %p471_p3, %p470_p2 }
  0x19   : > { %p473_p5 = pnand %p472_p4, %p466_p1 }
  0x1b   : > { %476 = shalt.err (!%p473_p5)
}
  0x1c   : > { %384 = dma.hbm_to_vmem [thread:$0]  (!%p606_p9), %s144_s27, 256, %s147_s29, %s133_s3  }
  0x1d   : > { %p152_p6 = pnand %p371_p10, %p151_p11 }
  0x1e   : > { %s157_s8 = sand.u32 (!%p152_p6), 1, %s511_s10  }
  0x1f   : > { %155 = sbr.rel (%p152_p6) target bundleno = 498 (0x1f2), region = 28  ;;  %s372_s9 = sshll.u32 (!%p152_p6), %s157_s8, 4 }
  0x20   : > { %s158_s15 = scalar_lea.sflag (!%p152_p6), [#allocation6], %s157_s8  ;;  %s161_s17 = scalar_lea.vmem (!%p152_p6), [#allocation5], %s372_s9 }
  0x24   : > { %502 = dma.done.wait (%p591_p7), %s158_s15, 256  }
  0x25   : > { %504 = vsyncadd (%p591_p7), %s158_s15, 4294967040  ;;  %vm198_vm0 = vcmask 7168   ;;  %v530_v0 = vmov 0   ;;  %v531_v1 = vmov -inf   ;;  %v202_v2 = vld [vmem:[%s161_s17] sm:$0xff]  ;;  %v203_v3 = vld [vmem:[%s161_s17 + $0x8] sm:$0xff]  ;;  %v206_v12 = vlaneseq }
  0x26   : > { %437 = vset.pattern.permute.xlu0 %v530_v0  ;;  %199 = vst.msk [vmem:[#allocation2] sm:$0xff] %vm198_vm0, %v531_v1  ;;  %438 = vset.pattern.permute.xlu1 %v530_v0  ;;  %v204_v4 = vmul.f32 32.0, %v202_v2  ;;  %v205_v5 = vmul.f32 32.0, %v203_v3  ;;  %p185_p8 = scmp.lt.s32.totalorder %s519_s12, 1  ;;  %v532_v8 = vmov 0.0  }
  0x27   : > { %201 = vst.msk [vmem:[#allocation4] sm:$0xff] %vm198_vm0, %v532_v8  ;;  %200 = vst.msk [vmem:[#allocation3] sm:$0xff] %vm198_vm0, %v532_v8  ;;  %v207_v13 = vand.u32 127, %v206_v12 }
  0x28   : > { %v227_v6 = vmax.f32 %v204_v4, %v205_v5  ;;  %s689_s12 = smov (!%p185_p8, %s519_s12), 1 }
  0x29   : > { %s373_s18 = sshll.u32 %s689_s12, 3  ;;  %v208_v14 = vadd.s32 128, %v207_v13 }
  0x2a   : > { %228 = vmax.xlane.f32.xlu0 %v227_v6  ;;  %s188_s22 = scalar_lea.vmem %s673_s0, %s373_s18  ;;  %s193_s25 = scalar_lea.vmem %s675_s2, %s373_s18 }
  0x2b   : > { %v209_v7 = vld [vmem:[%s188_s22] sm:$0xff] }
  0x2c   : > { %vm218_vm3 = vcmp.ge.s32.totalorder %v209_v7, 0  ;;  %vm219_vm4 = vcmp.lt.s32.totalorder %v209_v7, 256 }
  0x2d   : > { %v226_v9 = vld [vmem:[#allocation2] sm:$0xff]  ;;  %vm639_vm5 = vmand %vm218_vm3, %vm219_vm4 }
  0x2e   : > { %v260_v28 = vld [vmem:[#allocation4] sm:$0xff]  ;;  %v253_v39 = vld [vmem:[#allocation3] sm:$0xff] }
  0x40   : > { %214 = vperm.xlu0 %437, %v209_v7  }
  0xb3   : > { %v229_v10 = vpop.xlane.xlu0 %228 }
  0xb4   : > { %v230_v11 = vmax.f32 %v226_v9, %v229_v10 }
  0xb6   : > { %259 = vst.msk [vmem:[#allocation2] sm:$0xff] %vm198_vm0, %v230_v11  ;;  %236 = vperm.xlu1 %438, %v230_v11   ;;  %v231_v34 = vsub.f32 %v226_v9, %v230_v11 }
  0xb8   : > { %v232_v36 = vmul.f32 1.442695, %v231_v34 }
  0xbb   : > { %v215_v15 = vpop.permute.xlu0 %214 }
  0xbc   : > { %vm216_vm1 = vcmp.eq.s32.totalorder %v207_v13, %v215_v15  ;;  %vm217_vm2 = vcmp.eq.s32.totalorder %v208_v14, %v215_v15 }
  0xbd   : > { %v221_v16 = vsel %vm216_vm1, %v204_v4, 0.0  ;;  %v222_v17 = vsel %vm217_vm2, %v205_v5, 0.0  ;;  %v268_v49 = vld [vmem:[#allocation2] sm:$0xff] }
  0xbe   : > { %v223_v18 = vadd.f32 %v222_v17, %v221_v16 }
  0xda   : > { %224 = vadd.xlane.f32.xlu1 %v223_v18 }
 0x131   : > { %v237_v19 = vpop.permute.xlu1 %236 }
 0x132   : > { %v239_v20 = vsub.f32 %v204_v4, %v237_v19  ;;  %v240_v21 = vsub.f32 %v205_v5, %v237_v19 }
 0x134   : > { %v241_v22 = vmul.f32 1.442695, %v239_v20  ;;  %v243_v23 = vmul.f32 1.442695, %v240_v21 }
 0x136   : > { %439 = vpow2.f32 %v241_v22 }
 0x137   : > { %441 = vpow2.f32 %v243_v23 }
 0x143   : > { %v440_v24 = vpop.eup %439 }
 0x144   : > { %v442_v25 = vpop.eup %441 }
 0x145   : > { %v245_v26 = vadd.f32 %v442_v25, %v440_v24 }
 0x147   : > { %246 = vadd.xlane.f32.xlu1 %v245_v26 }
 0x163   : > { %v225_v27 = vpop.xlane.xlu1 %224 }
 0x164   : > { %v375_v29 = vadd.f32 -9.6, %v225_v27  ;;  %v248_v33 = vsub.f32 %v225_v27, %v230_v11 }
 0x166   : > { %v262_v31 = vsel %vm639_vm5, %v375_v29, 0.0  ;;  %v249_v35 = vmul.f32 1.442695, %v248_v33 }
 0x167   : > { %v263_v32 = vadd.f32 %v262_v31, %v260_v28 }
 0x168   : > { %443 = vpow2.f32 %v249_v35 }
 0x169   : > { %264 = vst.msk [vmem:[#allocation4] sm:$0xff] %vm198_vm0, %v263_v32  ;;  %445 = vpow2.f32 %v232_v36 }
 0x170   : > { %v273_v51 = vld [vmem:[#allocation4] sm:$0xff] }
 0x175   : > { %v444_v37 = vpop.eup %443 }
 0x176   : > { %v446_v38 = vpop.eup %445  ;;  %v251_v40 = vmul.f32 -0.9999323, %v444_v37 }
 0x177   : > { %v254_v41 = vmul.f32 %v446_v38, %v253_v39 }
 0x178   : > { %v252_v44 = vsel %vm639_vm5, %v251_v40, 0.0 }
 0x1d0   : > { %v247_v42 = vpop.xlane.xlu1 %246 }
 0x1d1   : > { %v255_v43 = vadd.f32 %v254_v41, %v247_v42 }
 0x1d3   : > { %v256_v45 = vadd.f32 %v255_v43, %v252_v44 }
 0x1d5   : > { %258 = vst.msk [vmem:[#allocation3] sm:$0xff] %vm198_vm0, %v256_v45 }
 0x1dc   : > { %v269_v46 = vld [vmem:[#allocation3] sm:$0xff] }
 0x1dd   : > { %447 = vlog2.f32 %v269_v46 }
 0x1ea   : > { %v448_v47 = vpop.eup %447 }
 0x1eb   : > { %v271_v48 = vmul.f32 0.6931472, %v448_v47 }
 0x1ed   : > { %v272_v50 = vadd.f32 %v271_v48, %v268_v49 }
 0x1ef   : > { %v274_v52 = vsub.f32 %v272_v50, %v273_v51 }
 0x1f1   : > { %275 = vst.msk [vmem:[%s193_s25] sm:$0xff] %vm198_vm0, %v274_v52 }
 0x1f2 PF: > { %s15_s14 = sadd.s32 1, %s527_s14   ;;  %s681_s9 = smov %s511_s10 }
 0x1f3   : > { %p12_p7 = scmp.ge.s32.totalorder %s15_s14, 4   ;;  %s682_s10 = smov %s515_s11 }
 0x1f4   : > { %s683_s11 = smov %s597_s21  ;;  %s684_s12 = smov %s523_s13 }
 0x1f5   : > { %s685_s13 = smov %s687_s16  ;;  %14 = sbr.rel (!%p12_p7) target bundleno = 4 (0x4), region = 79 }
 0x1fa   :  { %295 = vsyncpa [#allocation6], 1 }
 0x1fb   :  { %297 = vsyncpa [#allocation6 + $0x1], 1 }

</bundles_post_ra>
